<compile_context>
chip_gen: v7x
topology: tpu7x:2x2x1
jax: 0.10.0
libtpu: 0.0.40
codegen_flags: <defaults>
</compile_context>

<pallas_src>
import functools

import jax
import jax.numpy as jnp
from jax import lax
from jax.experimental import pallas as pl
from jax.experimental.pallas import tpu as pltpu


def rnn_fc_kernel(x_ref, wih_ref, whh_ref, b_ref, wfc_ref, bfc_ref,
                  out_ref, *, B, T):
    # x_ref:   (T*B, I)  time-major flat input (row = t*B + b)
    # wih_ref: (I, H)    input->hidden weight (pre-transposed vs PyTorch)
    # whh_ref: (H, H)    hidden->hidden weight (pre-transposed)
    # b_ref:   (1, H)    combined RNN bias (b_ih + b_hh)
    # wfc_ref: (H, O)    fc weight (pre-transposed)
    # bfc_ref: (1, O)    fc bias
    # out_ref: (T*B, O)  time-major flat output (row = t*B + b)
    H = whh_ref.shape[0]

    # ---- Hoisted input projection for ALL timesteps: one MXU matmul,
    #      RNN bias folded in once.
    u = jnp.dot(x_ref[...], wih_ref[...],
                preferred_element_type=jnp.float32) + b_ref[...]      # (T*B, H)

    whh = whh_ref[...]                                                # (H, H)

    # ---- Serial recurrence, fully unrolled (T is a static Python int).
    #      Hidden states stay register-resident; no VMEM stores here.
    h = jnp.zeros((B, H), dtype=jnp.float32)
    hs = []
    for t in range(T):
        u_t = u[t * B:(t + 1) * B, :]                                 # (B, H) static slice
        h = jnp.tanh(u_t + jnp.dot(h, whh,
                                   preferred_element_type=jnp.float32))
        hs.append(h)

    # (T*B, H) time-major, built from vregs — ~2 vregs total at these shapes.
    h_all = jnp.concatenate(hs, axis=0)

    # ---- Hoisted FC projection: one matmul + one bulk contiguous store.
    y = jnp.dot(h_all, wfc_ref[...],
                preferred_element_type=jnp.float32) + bfc_ref[...]    # (T*B, O)
    out_ref[...] = y.astype(out_ref.dtype)


def net_forward(x, params):
    """x: (B, T, I) float32 -> (B, T, O) float32.

    Mirrors PyTorch:
      h_t = tanh(x_t @ W_ih^T + b_ih + h_{t-1} @ W_hh^T + b_hh),  h_0 = 0
      out_t = h_t @ W_fc^T + b_fc
    """
    w_ih, w_hh, b_ih, b_hh, w_fc, b_fc = (
        params["w_ih"], params["w_hh"], params["b_ih"],
        params["b_hh"], params["w_fc"], params["b_fc"],
    )
    B, T, I = x.shape
    H = w_hh.shape[0]
    O = w_fc.shape[0]

    # Glue (plain JAX): time-major flatten of x and weight pre-transposition.
    # Time-major keeps every in-kernel per-step slice a contiguous
    # leading-dim slice; these are tiny XLA ops at these shapes.
    x_tm = jnp.transpose(x, (1, 0, 2)).reshape(T * B, I).astype(jnp.float32)
    wih_t = jnp.transpose(w_ih).astype(jnp.float32)              # (I, H)
    whh_t = jnp.transpose(w_hh).astype(jnp.float32)              # (H, H)
    b_rnn = (b_ih + b_hh).reshape(1, H).astype(jnp.float32)      # (1, H)
    wfc_t = jnp.transpose(w_fc).astype(jnp.float32)              # (H, O)
    bfc = b_fc.reshape(1, O).astype(jnp.float32)                 # (1, O)

    # Advisory cost estimate (tiny kernel; helps XLA schedule the glue ops).
    flops = (2 * T * B * I * H + T * B * H          # input projection + bias
             + T * (2 * B * H * H + B * H)          # recurrence matmuls + add
             + 2 * T * B * H * O + T * B * O)       # fc projection + bias
    transcendentals = T * B * H                     # tanh
    bytes_accessed = 4 * (T * B * I + I * H + H * H + H
                          + H * O + O + T * B * O)
    cost = pl.CostEstimate(flops=flops,
                           transcendentals=transcendentals,
                           bytes_accessed=bytes_accessed)

    vmem = pl.BlockSpec(memory_space=pltpu.MemorySpace.VMEM)
    kernel = functools.partial(rnn_fc_kernel, B=B, T=T)
    out_tm = pl.pallas_call(
        kernel,
        out_shape=jax.ShapeDtypeStruct((T * B, O), jnp.float32),
        in_specs=[vmem, vmem, vmem, vmem, vmem, vmem],
        out_specs=vmem,
        cost_estimate=cost,
    )(x_tm, wih_t, whh_t, b_rnn, wfc_t, bfc)

    # Time-major flat -> (T, B, O) -> (B, T, O). Tiny XLA transpose.
    return jnp.transpose(out_tm.reshape(T, B, O), (1, 0, 2))


def _reference_forward(x, params):
    """Pure-JAX reference of the PyTorch forward, for verification."""
    w_ih, w_hh, b_ih, b_hh, w_fc, b_fc = (
        params["w_ih"], params["w_hh"], params["b_ih"],
        params["b_hh"], params["w_fc"], params["b_fc"],
    )
    B, T, _ = x.shape
    H = w_hh.shape[0]

    def step(h, x_t):
        h_new = jnp.tanh(x_t @ w_ih.T + b_ih + h @ w_hh.T + b_hh)
        y = h_new @ w_fc.T + b_fc
        return h_new, y

    x_tm = jnp.transpose(x, (1, 0, 2))
    _, ys = lax.scan(step, jnp.zeros((B, H), jnp.float32), x_tm)
    return jnp.transpose(ys, (1, 0, 2))


if __name__ == "__main__":
    # Shapes implied by the module: vocab of 'apple'+'pple!' -> 5 unique chars.
    input_size = 5
    hidden_size = 5
    output_size = 5
    batch = 2
    seq = 5  # len('apple')

    key = jax.random.PRNGKey(0)
    ks = jax.random.split(key, 7)
    scale = 1.0 / jnp.sqrt(hidden_size)
    params = {
        "w_ih": jax.random.uniform(ks[0], (hidden_size, input_size),
                                   minval=-scale, maxval=scale, dtype=jnp.float32),
        "w_hh": jax.random.uniform(ks[1], (hidden_size, hidden_size),
                                   minval=-scale, maxval=scale, dtype=jnp.float32),
        "b_ih": jax.random.uniform(ks[2], (hidden_size,),
                                   minval=-scale, maxval=scale, dtype=jnp.float32),
        "b_hh": jax.random.uniform(ks[3], (hidden_size,),
                                   minval=-scale, maxval=scale, dtype=jnp.float32),
        "w_fc": jax.random.uniform(ks[4], (output_size, hidden_size),
                                   minval=-scale, maxval=scale, dtype=jnp.float32),
        "b_fc": jax.random.uniform(ks[5], (output_size,),
                                   minval=-scale, maxval=scale, dtype=jnp.float32),
    }

    x = jax.random.normal(ks[6], (batch, seq, input_size), dtype=jnp.float32)

    out = net_forward(x, params)
    out = jax.block_until_ready(out)

    ref = _reference_forward(x, params)
    assert out.shape == (batch, seq, output_size)
    assert jnp.allclose(out, ref, atol=1e-5, rtol=1e-5)

    print("KERNEL_OK")
</pallas_src>

<mosaic_0001>
module attributes {stable_mosaic.version = 11 : i64} {
  func.func @rnn_fc_kernel(%arg0: memref<10x5xf32, #tpu.memory_space<vmem>>, %arg1: memref<5x5xf32, #tpu.memory_space<vmem>>, %arg2: memref<5x5xf32, #tpu.memory_space<vmem>>, %arg3: memref<1x5xf32, #tpu.memory_space<vmem>>, %arg4: memref<5x5xf32, #tpu.memory_space<vmem>>, %arg5: memref<1x5xf32, #tpu.memory_space<vmem>>, %arg6: memref<10x5xf32, #tpu.memory_space<vmem>>) attributes {dimension_semantics = [], scalar_prefetch = 0 : i64, scratch_operands = 0 : i64, tpu.core_type = #tpu.core_type<tc>} {
    %c0 = arith.constant 0 : index
    %c0_0 = arith.constant 0 : index
    %0 = vector.load %arg0[%c0, %c0_0] : memref<10x5xf32, #tpu.memory_space<vmem>>, vector<10x5xf32>
    %c0_1 = arith.constant 0 : index
    %c0_2 = arith.constant 0 : index
    %1 = vector.load %arg1[%c0_1, %c0_2] : memref<5x5xf32, #tpu.memory_space<vmem>>, vector<5x5xf32>
    %cst = arith.constant dense<0.000000e+00> : vector<10x5xf32>
    %2 = tpu.matmul %0, %1, %cst {dimension_numbers = #tpu.dot_dimension_numbers<[1], [0], [0], [1], [0, 0, 1, 1], [], []>} : vector<10x5xf32>, vector<5x5xf32>, vector<10x5xf32> -> vector<10x5xf32>
    %c0_3 = arith.constant 0 : index
    %c0_4 = arith.constant 0 : index
    %3 = vector.load %arg3[%c0_3, %c0_4] : memref<1x5xf32, #tpu.memory_space<vmem>>, vector<1x5xf32>
    %4 = vector.broadcast %3 : vector<1x5xf32> to vector<10x5xf32>
    %5 = arith.addf %2, %4 : vector<10x5xf32>
    %c0_5 = arith.constant 0 : index
    %c0_6 = arith.constant 0 : index
    %6 = vector.load %arg2[%c0_5, %c0_6] : memref<5x5xf32, #tpu.memory_space<vmem>>, vector<5x5xf32>
    %cst_7 = arith.constant 0.000000e+00 : f32
    %7 = vector.broadcast %cst_7 : f32 to vector<2x5xf32>
    %8 = vector.extract_strided_slice %5 {offsets = [0, 0], sizes = [2, 5], strides = [1, 1]} : vector<10x5xf32> to vector<2x5xf32>
    %cst_8 = arith.constant dense<0.000000e+00> : vector<2x5xf32>
    %9 = tpu.matmul %7, %6, %cst_8 {dimension_numbers = #tpu.dot_dimension_numbers<[1], [0], [0], [1], [0, 0, 1, 1], [], []>} : vector<2x5xf32>, vector<5x5xf32>, vector<2x5xf32> -> vector<2x5xf32>
    %10 = arith.addf %8, %9 : vector<2x5xf32>
    %11 = math.tanh %10 : vector<2x5xf32>
    %12 = vector.extract_strided_slice %5 {offsets = [2, 0], sizes = [2, 5], strides = [1, 1]} : vector<10x5xf32> to vector<2x5xf32>
    %cst_9 = arith.constant dense<0.000000e+00> : vector<2x5xf32>
    %13 = tpu.matmul %11, %6, %cst_9 {dimension_numbers = #tpu.dot_dimension_numbers<[1], [0], [0], [1], [0, 0, 1, 1], [], []>} : vector<2x5xf32>, vector<5x5xf32>, vector<2x5xf32> -> vector<2x5xf32>
    %14 = arith.addf %12, %13 : vector<2x5xf32>
    %15 = math.tanh %14 : vector<2x5xf32>
    %16 = vector.extract_strided_slice %5 {offsets = [4, 0], sizes = [2, 5], strides = [1, 1]} : vector<10x5xf32> to vector<2x5xf32>
    %cst_10 = arith.constant dense<0.000000e+00> : vector<2x5xf32>
    %17 = tpu.matmul %15, %6, %cst_10 {dimension_numbers = #tpu.dot_dimension_numbers<[1], [0], [0], [1], [0, 0, 1, 1], [], []>} : vector<2x5xf32>, vector<5x5xf32>, vector<2x5xf32> -> vector<2x5xf32>
    %18 = arith.addf %16, %17 : vector<2x5xf32>
    %19 = math.tanh %18 : vector<2x5xf32>
    %20 = vector.extract_strided_slice %5 {offsets = [6, 0], sizes = [2, 5], strides = [1, 1]} : vector<10x5xf32> to vector<2x5xf32>
    %cst_11 = arith.constant dense<0.000000e+00> : vector<2x5xf32>
    %21 = tpu.matmul %19, %6, %cst_11 {dimension_numbers = #tpu.dot_dimension_numbers<[1], [0], [0], [1], [0, 0, 1, 1], [], []>} : vector<2x5xf32>, vector<5x5xf32>, vector<2x5xf32> -> vector<2x5xf32>
    %22 = arith.addf %20, %21 : vector<2x5xf32>
    %23 = math.tanh %22 : vector<2x5xf32>
    %24 = vector.extract_strided_slice %5 {offsets = [8, 0], sizes = [2, 5], strides = [1, 1]} : vector<10x5xf32> to vector<2x5xf32>
    %cst_12 = arith.constant dense<0.000000e+00> : vector<2x5xf32>
    %25 = tpu.matmul %23, %6, %cst_12 {dimension_numbers = #tpu.dot_dimension_numbers<[1], [0], [0], [1], [0, 0, 1, 1], [], []>} : vector<2x5xf32>, vector<5x5xf32>, vector<2x5xf32> -> vector<2x5xf32>
    %26 = arith.addf %24, %25 : vector<2x5xf32>
    %27 = math.tanh %26 : vector<2x5xf32>
    %28 = tpu.concatenate %11, %15, %19, %23, %27 in 0 : vector<2x5xf32>, vector<2x5xf32>, vector<2x5xf32>, vector<2x5xf32>, vector<2x5xf32> -> vector<10x5xf32>
    %c0_13 = arith.constant 0 : index
    %c0_14 = arith.constant 0 : index
    %29 = vector.load %arg4[%c0_13, %c0_14] : memref<5x5xf32, #tpu.memory_space<vmem>>, vector<5x5xf32>
    %cst_15 = arith.constant dense<0.000000e+00> : vector<10x5xf32>
    %30 = tpu.matmul %28, %29, %cst_15 {dimension_numbers = #tpu.dot_dimension_numbers<[1], [0], [0], [1], [0, 0, 1, 1], [], []>} : vector<10x5xf32>, vector<5x5xf32>, vector<10x5xf32> -> vector<10x5xf32>
    %c0_16 = arith.constant 0 : index
    %c0_17 = arith.constant 0 : index
    %31 = vector.load %arg5[%c0_16, %c0_17] : memref<1x5xf32, #tpu.memory_space<vmem>>, vector<1x5xf32>
    %32 = vector.broadcast %31 : vector<1x5xf32> to vector<10x5xf32>
    %33 = arith.addf %30, %32 : vector<10x5xf32>
    %c0_18 = arith.constant 0 : index
    %c0_19 = arith.constant 0 : index
    %34 = vector.load %arg6[%c0_18, %c0_19] : memref<10x5xf32, #tpu.memory_space<vmem>>, vector<10x5xf32>
    tpu.vector_store %arg6[%c0_18, %c0_19], %33 {strides = array<i32>} : memref<10x5xf32, #tpu.memory_space<vmem>>, vector<10x5xf32>,
    return
  }
}

</mosaic_0001>

<bundles_post_ra>
// kernel: tpu_custom_call.1
= control target key start
LH: loop header
LB: loop body
LE: loop exit
PB: predicated region body
PF: predicated region fallthrough
CT: control target
= control target key end

     0   :  { %vm40_vm0 = vcmask 1044480   ;;  %vm33_vm1 = vcmask 39936   ;;  %v695_v3 = vmov 0.0   ;;  %vm696_vm2 = vmmov 0   ;;  %s782_s1 = inlined_call_operand.vmem [shape: f32[5,5], index: 1, kind: input, shape index: {}]   ;;  %s783_s0 = inlined_call_operand.vmem [shape: f32[10,5], index: 0, kind: input, shape index: {}]   ;;  %s784_s2 = inlined_call_operand.vmem [shape: f32[5,5], index: 2, kind: input, shape index: {}]   ;;  %s785_s3 = inlined_call_operand.vmem [shape: f32[1,5], index: 3, kind: input, shape index: {}]   ;;  %s786_s4 = inlined_call_operand.vmem [shape: f32[5,5], index: 4, kind: input, shape index: {}]   ;;  %s787_s5 = inlined_call_operand.vmem [shape: f32[1,5], index: 5, kind: input, shape index: {}]   ;;  %s788_s6 = inlined_call_operand.vmem [shape: f32[10,5], index: 6, kind: output, shape index: {}]  }
   0x1   :  { %v25_v0 = vld [vmem:[%s782_s1] sm:$0x1f]  ;;  %v24_v2 = vld [vmem:[%s783_s0 + $0x8] sm:$0x3]  ;;  %653 = vmatprep.subr.mxu1 %v695_v3  ;;  %655 = vmatprep.mubr.msk.f32.mxu1 %vm696_vm2, %v695_v3  ;;  %vm510_vm3 = vcmask 1041408   ;;  %vm512_vm4 = vcmask 1043456  }
   0x2   :  { %v23_v1 = vld [vmem:[%s783_s0] sm:$0xff]  ;;  %648 = vmatprep.subr.msk.mxu0 %vm40_vm0, %v25_v0  ;;  %vm514_vm5 = vcmask 1045504   ;;  %vm609_vm6 = vcmask 33792  }
   0x3   :  { %650 = vmatprep.mubr.msk.f32.mxu0 %vm33_vm1, %v23_v1  ;;  %v119_v4 = vld [vmem:[%s784_s2] sm:$0x1f]  ;;  %649 = vmatpush3.msk.msra.mxu0 %vm40_vm0, %v25_v0 }
   0x4   :  { %654 = vmatpush3.msk.msra.mxu1 %vm40_vm0, %v119_v4  ;;  %651 = vmatmul.mubr.msk.f32.vlgmr.msra.gmra.mrb[0].mxu0 %vm33_vm1, %v24_v2  ;;  %v615_v5 = vld [vmem:[%s785_s3] ss:$0 sm:$0xff] }
   0x5   :  { %656 = vmatmul.mubr.f32.vlgmr.msra.gmra.mrb[0].mxu1 %v695_v3  ;;  %658 = vmatprep.subr.mxu0 %v695_v3  ;;  %v516_v35 = vld [vmem:[%s786_s4] sm:$0x1f] }
   0x6   :  { %660 = vmatprep.mubr.msk.f32.mxu0 %vm696_vm2, %v695_v3  ;;  %659 = vmatpush3.msk.msra.mxu0 %vm40_vm0, %v119_v4  ;;  %v628_v40 = vld [vmem:[%s787_s5] ss:$0 sm:$0xff] }
   0x7   :  { %663 = vmatprep.subr.mxu1 %v695_v3  ;;  %665 = vmatprep.mubr.msk.f32.mxu1 %vm696_vm2, %v695_v3 }
   0x8   :  { %664 = vmatpush3.msk.msra.mxu1 %vm40_vm0, %v119_v4  ;;  %668 = vmatprep.subr.mxu0 %v695_v3 }
   0x9   :  { %673 = vmatprep.subr.mxu1 %v695_v3 }
  0xd7   :  { %v652_v6 = vpop.f32.mrb[0].mxu0 }
  0xd8   :  { %v192_v7 = vpop.f32.mrb[0].mxu1  ;;  %v116_v8 = vadd.f32 %v652_v6, %v615_v5  ;;  %v110_v9 = vpop.f32.mrb[1].mxu0 }
  0xd9   :  { %v657_v10 = vpop.f32.mrb[1].mxu1  ;;  %v111_v11 = vadd.f32 %v615_v5, %v110_v9 }
  0xdb   :  { %v196_v12 = vadd.f32 %v192_v7, %v111_v11 }
  0xdd   :  { %685 = vtanh.f32 %v196_v12 }
  0xe7   :  { %v686_v13 = vpop.eup %685 }
  0xe8   :  { %661 = vmatmul.mubr.msk.f32.vlgmr.msra.gmra.mrb[2].mxu0 %vm33_vm1, %v686_v13 }
  0xe9   :  { %669 = vmatpush3.msk.msra.mxu0 %vm40_vm0, %v119_v4  ;;  %670 = vmatprep.mubr.msk.f32.mxu0 %vm696_vm2, %v695_v3 }
  0xea   :  { %678 = vmatprep.subr.msk.mxu0 %vm40_vm0, %v516_v35 }
 0x1bb   :  { %v267_v14 = vpop.f32.mrb[2].mxu0 }
 0x1bc   :  { %v272_v15 = vrot.slane %v267_v14, 6  ;;  %v662_v16 = vpop.f32.mrb[3].mxu0 }
 0x1be   :  { %v274_v17 = vadd.f32 %v272_v15, %v111_v11 }
 0x1c0   :  { %687 = vtanh.f32 %v274_v17 }
 0x1ca   :  { %v688_v18 = vpop.eup %687 }
 0x1cb   :  { %v277_v19 = vrot.slane %v688_v18, 2  ;;  %v511_v25 = vsel %vm510_vm3, %v686_v13, %v688_v18 }
 0x1cd   :  { %666 = vmatmul.mubr.msk.f32.vlgmr.msra.gmra.mrb[2].mxu1 %vm33_vm1, %v277_v19 }
 0x1ce   :  { %674 = vmatpush3.msk.msra.mxu1 %vm40_vm0, %v119_v4  ;;  %675 = vmatprep.mubr.msk.f32.mxu1 %vm696_vm2, %v695_v3 }
 0x2a0   :  { %v346_v20 = vpop.f32.mrb[2].mxu1 }
 0x2a1   :  { %v351_v21 = vrot.slane %v346_v20, 4  ;;  %v667_v22 = vpop.f32.mrb[3].mxu1 }
 0x2a3   :  { %v353_v23 = vadd.f32 %v351_v21, %v111_v11 }
 0x2a5   :  { %689 = vtanh.f32 %v353_v23 }
 0x2af   :  { %v690_v24 = vpop.eup %689 }
 0x2b0   :  { %v356_v26 = vrot.slane %v690_v24, 4  ;;  %v513_v27 = vsel %vm512_vm4, %v511_v25, %v690_v24 }
 0x2b2   :  { %671 = vmatmul.mubr.msk.f32.vlgmr.msra.gmra.mrb[4].mxu0 %vm33_vm1, %v356_v26 }
 0x2b3   :  { %679 = vmatpush3.msk.msra.mxu0 %vm40_vm0, %v516_v35 }
 0x385   :  { %v425_v28 = vpop.f32.mrb[4].mxu0 }
 0x386   :  { %v430_v29 = vrot.slane %v425_v28, 2  ;;  %v672_v30 = vpop.f32.mrb[5].mxu0 }
 0x388   :  { %v432_v31 = vadd.f32 %v430_v29, %v111_v11 }
 0x38a   :  { %691 = vtanh.f32 %v432_v31 }
 0x394   :  { %v692_v32 = vpop.eup %691 }
 0x395   :  { %v515_v33 = vsel %vm514_vm5, %v513_v27, %v692_v32  ;;  %v435_v34 = vrot.slane %v692_v32, 6 }
 0x396   :  { %680 = vmatprep.mubr.msk.f32.mxu0 %vm33_vm1, %v515_v33 }
 0x397   :  { %676 = vmatmul.mubr.msk.f32.vlgmr.msra.gmra.mrb[4].mxu1 %vm33_vm1, %v435_v34 }
 0x46a   :  { %v504_v36 = vpop.f32.mrb[4].mxu1 }
 0x46b   :  { %v508_v37 = vadd.f32 %v504_v36, %v116_v8  ;;  %v677_v38 = vpop.f32.mrb[5].mxu1 }
 0x46d   :  { %693 = vtanh.f32 %v508_v37 }
 0x477   :  { %v694_v39 = vpop.eup %693 }
 0x478   :  { %681 = vmatmul.mubr.msk.f32.vlgmr.msra.gmra.mrb[6].mxu0 %vm33_vm1, %v694_v39 }
 0x54b   :  { %v682_v41 = vpop.f32.mrb[6].mxu0 }
 0x54c   :  { %v605_v42 = vadd.f32 %v682_v41, %v628_v40  ;;  %v599_v43 = vpop.f32.mrb[7].mxu0 }
 0x54d   :  { %v600_v44 = vadd.f32 %v628_v40, %v599_v43 }
 0x54e   :  { %610 = vst.msk [vmem:[%s788_s6 + $0x8] sm:$0x3] %vm609_vm6, %v605_v42 }
 0x54f   :  { %608 = vst.msk [vmem:[%s788_s6] sm:$0xff] %vm33_vm1, %v600_v44 }

</bundles_post_ra>
